<compile_context>
chip_gen: v7x
topology: tpu7x:2x2x1
jax: 0.10.0
libtpu: 0.0.40
codegen_flags: <defaults>
</compile_context>

<pallas_src>
import warnings

import jax
import jax.numpy as jnp
from jax.experimental import pallas as pl
from jax.experimental.pallas import tpu as pltpu


def _round_up(x: int, m: int) -> int:
    return -(-x // m) * m


def _pe_kernel(s1_ref, s2_ref, base_ref, out_ref):
    # s1_ref / s2_ref: (tile, slab_cols) resident within-tile sin/cos tables (f32).
    # base_ref:        (1, 2, slab_cols) per-tile [cos(base), sin(base)].
    # out_ref:         (tile, slab_cols) output tile.
    base = base_ref[...]                 # (1, 2, C)
    cos_b = base[:, 0, :]                # (1, C)
    sin_b = base[:, 1, :]                # (1, C)
    out_ref[...] = (s1_ref[...] * cos_b + s2_ref[...] * sin_b).astype(out_ref.dtype)


def make_positional_encoding(max_len: int, d_model: int,
                             dtype=jnp.float32, tile_rows: int | None = None):
    """Builds the (max_len, d_model) sinusoidal encoding table with a Pallas kernel."""
    if max_len >= (1 << 24):
        raise ValueError("max_len must be < 2**24 so positions are exact in float32")

    itemsize = jnp.dtype(dtype).itemsize
    # packed-sublane multiple: f32 -> 8, bf16 -> 16, int8/fp8 -> 32
    sub_mult = max(8, 32 // itemsize)

    # Lane packing: pack k consecutive positions per slab row so the stored last
    # dim is >= 128 (unmasked, lane-dense vector stores).
    if d_model < 128 and 128 % d_model == 0:
        k = 128 // d_model
    else:
        k = 1
        if d_model < 128:
            warnings.warn(
                "d_model < 128 and does not divide 128: output stores are "
                "lane-masked (correct but slow path).")
    slab_cols = k * d_model

    n_rows = -(-max_len // k)                      # slab rows needed
    out_rows = _round_up(n_rows, sub_mult)         # minimal sublane padding only

    # Tile rows from a total-VMEM byte budget:
    #   output double buffer: 2*itemsize bytes/elem
    #   S1 + S2 f32 tables (conservatively counted double-buffered): 16 bytes/elem
    if tile_rows is None:
        budget = 12 * 1024 * 1024                  # < v5e 16 MiB scoped default
        bytes_per_row = slab_cols * (2 * itemsize + 16)
        tile = max(sub_mult, (budget // bytes_per_row) // sub_mult * sub_mult)
    else:
        tile = max(sub_mult, _round_up(int(tile_rows), sub_mult))
    # Keep >= 2 grid steps when possible so v7x can shard across both TensorCores.
    tile = min(tile, max(sub_mult, _round_up(-(-out_rows // 2), sub_mult)))

    n_tiles = -(-out_rows // tile)                 # ragged last block handled by Pallas

    # ---- host-side (plain JAX) precompute of the small tables -----------------
    col = jnp.arange(d_model, dtype=jnp.int32)
    two_i = ((col // 2) * 2).astype(jnp.float32)
    inv_freq = jnp.exp(-(two_i / jnp.float32(d_model)) * jnp.log(jnp.float32(10000.0)))
    even = (col % 2) == 0

    w = jnp.tile(inv_freq, k)[None, :]                                  # (1, C)
    even_c = jnp.tile(even, k)[None, :]                                 # (1, C)
    group = jnp.repeat(jnp.arange(k, dtype=jnp.float32), d_model)[None, :]  # (1, C)

    # Within-tile tables: q = r*k + group is the position offset inside a tile.
    r = jnp.arange(tile, dtype=jnp.float32)[:, None]                    # (tile, 1)
    theta_q = (r * jnp.float32(k) + group) * w                          # (tile, C)
    sin_q, cos_q = jnp.sin(theta_q), jnp.cos(theta_q)
    s1 = jnp.where(even_c, sin_q, cos_q).astype(jnp.float32)            # (tile, C)
    s2 = jnp.where(even_c, cos_q, -sin_q).astype(jnp.float32)           # (tile, C)

    # Per-tile base angle: theta_base = (i * tile * k) * inv_freq (exact int * w).
    p0 = (jnp.arange(n_tiles, dtype=jnp.float32) * jnp.float32(tile * k))[:, None]
    theta_b = p0 * w                                                    # (n_tiles, C)
    base = jnp.stack([jnp.cos(theta_b), jnp.sin(theta_b)], axis=1)      # (n_tiles, 2, C)
    base = base.astype(jnp.float32)

    # ---- Pallas call -----------------------------------------------------------
    slab = pl.pallas_call(
        _pe_kernel,
        out_shape=jax.ShapeDtypeStruct((out_rows, slab_cols), dtype),
        grid=(n_tiles,),
        in_specs=[
            pl.BlockSpec((tile, slab_cols), lambda i: (0, 0)),        # S1 (resident)
            pl.BlockSpec((tile, slab_cols), lambda i: (0, 0)),        # S2 (resident)
            pl.BlockSpec((1, 2, slab_cols), lambda i: (i, 0, 0)),     # per-tile base
        ],
        out_specs=pl.BlockSpec((tile, slab_cols), lambda i: (i, 0)),
        compiler_params=pltpu.CompilerParams(
            dimension_semantics=("parallel",)),
    )(s1, s2, base)

    # Unpack the lane-dense slab back to (max_len, d_model).
    table = slab.reshape(out_rows * k, d_model)[:max_len, :]
    return table


class PositionalEncoding:
    """JAX/Pallas port of the PyTorch PositionalEncoding module."""

    def __init__(self, d_model: int, max_len: int, dtype=jnp.float32):
        self.d_model = d_model
        self.max_len = max_len
        self.encoding = make_positional_encoding(max_len, d_model, dtype=dtype)

    def __call__(self, x):
        # forward: return self.encoding[:x.size(1), :]
        seq_len = x.shape[1]
        return self.encoding[:seq_len, :]


def _reference_encoding(max_len, d_model):
    pos = jnp.arange(max_len, dtype=jnp.float32)[:, None]
    _2i = jnp.arange(0, d_model, 2, dtype=jnp.float32)
    angle = pos / (10000.0 ** (_2i / d_model))
    enc = jnp.zeros((max_len, d_model), dtype=jnp.float32)
    enc = enc.at[:, 0::2].set(jnp.sin(angle))
    enc = enc.at[:, 1::2].set(jnp.cos(angle))
    return enc


if __name__ == "__main__":
    d_model = 32
    max_len = 64
    batch, seq_len = 2, 8

    key = jax.random.PRNGKey(0)
    x = jax.random.normal(key, (batch, seq_len, d_model), dtype=jnp.float32)

    pe = PositionalEncoding(d_model=d_model, max_len=max_len)
    out = pe(x)
    out = jax.block_until_ready(out)

    assert out.shape == (seq_len, d_model), out.shape
    ref = _reference_encoding(max_len, d_model)[:seq_len, :]
    assert jnp.allclose(out, ref, atol=1e-4, rtol=1e-5), "mismatch vs reference"

    # Also sanity-check a non-multiple-of-8 max_len with d_model >= 128 (k=1 path,
    # ragged rows, two-tile grid).
    big = make_positional_encoding(max_len=300, d_model=128)
    big = jax.block_until_ready(big)
    ref_big = _reference_encoding(300, 128)
    assert jnp.allclose(big, ref_big, atol=1e-4, rtol=1e-5), "mismatch (big) vs reference"

    print("KERNEL_OK")
</pallas_src>

<mosaic_0001>
module attributes {stable_mosaic.version = 11 : i64} {
  func.func @_pe_kernel(%arg0: i32, %arg1: memref<8x128xf32, #tpu.memory_space<vmem>>, %arg2: memref<8x128xf32, #tpu.memory_space<vmem>>, %arg3: memref<1x2x128xf32, #tpu.memory_space<vmem>>, %arg4: memref<8x128xf32, #tpu.memory_space<vmem>>) attributes {dimension_semantics = [#tpu.dimension_semantics<parallel>], iteration_bounds = array<i64: 2>, scalar_prefetch = 0 : i64, scratch_operands = 0 : i64, tpu.core_type = #tpu.core_type<tc>, window_params = [{pipeline_mode = #tpu.pipeline_mode<synchronous>, transform_indices = @transform_0, window_bounds = array<i64: 8, 128>}, {pipeline_mode = #tpu.pipeline_mode<synchronous>, transform_indices = @transform_1, window_bounds = array<i64: 8, 128>}, {transform_indices = @transform_2, window_bounds = array<i64: 1, 2, 128>}, {transform_indices = @transform_3, window_bounds = array<i64: 8, 128>}]} {
    %c0 = arith.constant 0 : index
    %c0_0 = arith.constant 0 : index
    %c0_1 = arith.constant 0 : index
    %0 = vector.load %arg3[%c0, %c0_0, %c0_1] : memref<1x2x128xf32, #tpu.memory_space<vmem>>, vector<1x2x128xf32>
    %1 = vector.extract_strided_slice %0 {offsets = [0, 0, 0], sizes = [1, 1, 128], strides = [1, 1, 1]} : vector<1x2x128xf32> to vector<1x1x128xf32>
    %2 = vector.shape_cast %1 : vector<1x1x128xf32> to vector<1x128xf32>
    %3 = vector.extract_strided_slice %0 {offsets = [0, 1, 0], sizes = [1, 1, 128], strides = [1, 1, 1]} : vector<1x2x128xf32> to vector<1x1x128xf32>
    %4 = vector.shape_cast %3 : vector<1x1x128xf32> to vector<1x128xf32>
    %c0_2 = arith.constant 0 : index
    %c0_3 = arith.constant 0 : index
    %5 = vector.load %arg1[%c0_2, %c0_3] : memref<8x128xf32, #tpu.memory_space<vmem>>, vector<8x128xf32>
    %6 = vector.broadcast %2 : vector<1x128xf32> to vector<8x128xf32>
    %7 = arith.mulf %5, %6 : vector<8x128xf32>
    %c0_4 = arith.constant 0 : index
    %c0_5 = arith.constant 0 : index
    %8 = vector.load %arg2[%c0_4, %c0_5] : memref<8x128xf32, #tpu.memory_space<vmem>>, vector<8x128xf32>
    %9 = vector.broadcast %4 : vector<1x128xf32> to vector<8x128xf32>
    %10 = arith.mulf %8, %9 : vector<8x128xf32>
    %11 = arith.addf %7, %10 : vector<8x128xf32>
    %c0_6 = arith.constant 0 : index
    %c0_7 = arith.constant 0 : index
    %12 = vector.load %arg4[%c0_6, %c0_7] : memref<8x128xf32, #tpu.memory_space<vmem>>, vector<8x128xf32>
    tpu.vector_store %arg4[%c0_6, %c0_7], %11 {strides = array<i32>} : memref<8x128xf32, #tpu.memory_space<vmem>>, vector<8x128xf32>,
    return
  }
  func.func @transform_0(%arg0: i32) -> (i32, i32) {
    %c0_i32 = arith.constant 0 : i32
    %c0_i32_0 = arith.constant 0 : i32
    %c0_i32_1 = arith.constant 0 : i32
    return %c0_i32, %c0_i32_0 : i32, i32
  }
  func.func @transform_1(%arg0: i32) -> (i32, i32) {
    %c0_i32 = arith.constant 0 : i32
    %c0_i32_0 = arith.constant 0 : i32
    %c0_i32_1 = arith.constant 0 : i32
    return %c0_i32, %c0_i32_0 : i32, i32
  }
  func.func @transform_2(%arg0: i32) -> (i32, i32, i32) {
    %c0_i32 = arith.constant 0 : i32
    %c0_i32_0 = arith.constant 0 : i32
    %c0_i32_1 = arith.constant 0 : i32
    return %arg0, %c0_i32, %c0_i32_0 : i32, i32, i32
  }
  func.func @transform_3(%arg0: i32) -> (i32, i32) {
    %c0_i32 = arith.constant 0 : i32
    %c0_i32_0 = arith.constant 0 : i32
    return %arg0, %c0_i32 : i32, i32
  }
}

</mosaic_0001>

<bundles_post_ra>
// kernel: tpu_custom_call.1
= control target key start
LH: loop header
LB: loop body
LE: loop exit
PB: predicated region body
PF: predicated region fallthrough
CT: control target
= control target key end

     0   :  { %8 = vsyncpa [#allocation3], 0  ;;  %s699_s0 = inlined_call_operand.hbm [shape: f32[8,128], index: 0, kind: input, shape index: {}]   ;;  %s700_s1 = inlined_call_operand.hbm [shape: f32[8,128], index: 1, kind: input, shape index: {}]   ;;  %s701_s2 = inlined_call_operand.vmem [shape: f32[2,2,128], index: 2, kind: input, shape index: {}]   ;;  %s702_s3 = inlined_call_operand.hbm [shape: f32[16,128], index: 3, kind: output, shape index: {}]  }
   0x1   :  { %9 = vsyncpa [#allocation6], 0 }
   0x2   :  { %10 = vsyncpa [#allocation4], 0 }
   0x3   :  { %12 = vsyncpa [#allocation4 + $0x1], 0  ;;  %s527_s12 = smov 0   ;;  %s529_s13 = smov 0  }
   0x4   :  { %s531_s14 = smov 0   ;;  %s533_s15 = smov 0  }
   0x5 LB: > { %s548_s16 = sadd.s32 4294967295, %s502_s15   ;;  %s302_s17 = sadd.s32 4294967294, %s502_s15   ;;  %s502_s15 = sphi %s533_s15, %s720_s15   ;;  %s498_s14 = sphi %s531_s14, %s719_s14   ;;  %s494_s13 = sphi %s529_s13, %s718_s13   ;;  %s490_s12 = sphi %s527_s12, %s717_s12  }
   0x6   : > { %s552_s18 = sadd.s32 1, %s502_s15   ;;  %s93_s19 = sadd.s32 1, %s498_s14 }
   0x7   : > { %s90_s20 = ssub.s32 %s502_s15, %s552_s18  ;;  %p103_p0 = scmp.ne.s32.totalorder %s498_s14, %s494_s13 }
   0x8   : > { %p91_p1 = scmp.eq.s32.totalorder %s90_s20, 0  ;;  %p104_p2 = scmp.eq.s32.totalorder %s548_s16, 1 }
   0x9   : > { %p109_p3 = scmp.ne.s32.totalorder %s494_s13, %s490_s12  ;;  %p110_p4 = scmp.eq.s32.totalorder %s302_s17, 1 }
   0xa   : > { %s563_s21 = scalar_select %p91_p1, %s498_s14, %s93_s19  }
   0xb   : > { %p565_p5 = por %p104_p2, %p103_p0  ;;  %p569_p6 = por %p110_p4, %p109_p3 }
   0xc   : > { %p303_p7 = scmp.ge.s32.totalorder %s502_s15, 1  ;;  %p117_p8 = scmp.lt.s32.totalorder %s502_s15, 3 }
   0xd   : > { %s706_s22 = scalar_select %p565_p5, 1, 0 }
   0xe   : > { %s707_s23 = scalar_select %p569_p6, 1, 0 }
   0xf   : > { %p703_p9 = scmp.eq.s32.totalorder %s548_s16, 0  ;;  %p576_p10 = pnand %p303_p7, %p117_p8 }
  0x10   : > { %s504_s25 = smov [#allocation2]   ;;  %s505_s27 = smov [#allocation5]  }
  0x11   : > { %s708_s24 = scalar_select %p576_p10, 1, 0 }
  0x12   : > { %s130_s26 = sshll.u32 %s504_s25, 4  ;;  %p326_p11 = pneg %p576_p10  ;;  %s131_s26 = int_to_ptr.vmem [resolvable:$true] %s130_s26 }
  0x13   : > { %s141_s28 = sshll.u32 %s505_s27, 4  ;;  %s376_s5 = scalar_lea.hbm %s699_s0, 128  ;;  %s588_s28 = int_to_ptr.vmem [resolvable:$true] %s141_s28 }
  0x14   : > { %p584_p12 = pnand %p703_p9, %p326_p11  ;;  %p377_p13 = scmp.ne.s32.totalorder %s699_s0, %s376_s5 }
  0x15   : > { %p383_p3 = scmp.lt.u32.totalorder %s376_s5, %s699_s0 }
  0x16   : > { %p378_p0 = pneg %p584_p12 }
  0x18   : > { %p379_p1 = pnand %p378_p0, %p377_p13 }
  0x1a   : > { %p380_p2 = pneg %p379_p1 }
  0x1c   : > { %p385_p4 = pnand %p383_p3, %p380_p2 }
  0x1e   : > { %388 = shalt.err (!%p385_p4)
}
  0x1f   : > { %s389_s10 = scalar_lea.vmem %s131_s26, 128  ;;  %p397_p9 = scmp.lt.s32.totalorder %s131_s26, %s131_s26 }
  0x20   : > { %p390_p7 = scmp.ne.s32.totalorder %s131_s26, %s389_s10  ;;  %p398_p6 = scmp.lt.s32.totalorder %s389_s10, %s389_s10 }
  0x22   : > { %p392_p8 = pnand %p390_p7, %p378_p0  ;;  %p399_p5 = por %p398_p6, %p397_p9 }
  0x24   : > { %p393_p11 = pneg %p392_p8 }
  0x26   : > { %p400_p10 = pnand %p399_p5, %p393_p11 }
  0x28   : > { %403 = shalt.err (!%p400_p10)
}
  0x29   : > { %329 = dma.hbm_to_vmem [thread:$0]  (!%p584_p12), %s699_s0, 128, %s131_s26, [#allocation3]  }
  0x2a   : > { %s404_s25 = scalar_lea.hbm %s700_s1, 128 }
  0x2b   : > { %p405_p13 = scmp.ne.s32.totalorder %s700_s1, %s404_s25  ;;  %p411_p9 = scmp.lt.u32.totalorder %s404_s25, %s700_s1 }
  0x2d   : > { %p407_p6 = pnand %p405_p13, %p378_p0 }
  0x2f   : > { %p408_p5 = pneg %p407_p6 }
  0x31   : > { %p413_p10 = pnand %p411_p9, %p408_p5 }
  0x33   : > { %416 = shalt.err (!%p413_p10)
}
  0x34   : > { %s417_s26 = scalar_lea.vmem %s588_s28, 128  ;;  %p425_p4 = scmp.lt.s32.totalorder %s588_s28, %s588_s28 }
  0x35   : > { %p418_p1 = scmp.ne.s32.totalorder %s588_s28, %s417_s26  ;;  %p426_p7 = scmp.lt.s32.totalorder %s417_s26, %s417_s26 }
  0x37   : > { %p420_p2 = pnand %p418_p1, %p378_p0  ;;  %p427_p8 = por %p426_p7, %p425_p4 }
  0x39   : > { %p421_p3 = pneg %p420_p2 }
  0x3b   : > { %p428_p11 = pnand %p427_p8, %p421_p3 }
  0x3d   : > { %431 = shalt.err (!%p428_p11)
}
  0x3e   : > { %332 = dma.hbm_to_vmem [thread:$0]  (!%p584_p12), %s700_s1, 128, %s588_s28, [#allocation6]  }
  0x3f   : > { %p710_p13 = scmp.ne.s32.totalorder %s708_s24, 0 }
  0x40   : > { %p711_p6 = scmp.eq.s32.totalorder (!%p710_p13), %s548_s16, 0 }
  0x41   : > { %161 = sbr.rel (%p710_p13) target bundleno = 106 (0x6a), region = 32 }
  0x48   : > { %477 = dma.done.wait (%p711_p6), [#allocation3], 128   ;;  %p712_p0 = pmov %p711_p6 }
  0x4a   : > { %479 = vsyncadd (%p712_p0), [#allocation3], 4294967168  ;;  %p713_p5 = pmov %p712_p0 }
  0x4b   : > { %p714_p9 = pmov %p712_p0 }
  0x4c   : > { %481 = dma.done.wait (%p713_p5), [#allocation6], 128  }
  0x4d   : > { %483 = vsyncadd (%p714_p9), [#allocation6], 4294967168  ;;  %s185_s29 = sand.u32 1, %s494_s13   ;;  %p188_p12 = scmp.lt.s32.totalorder %s548_s16, 1  ;;  %v194_v0 = vlaneseq  ;;  %v193_v5 = vld [vmem:[#allocation2] sm:$0xff]  ;;  %v199_v6 = vld [vmem:[#allocation5] sm:$0xff] }
  0x4e   : > { %s310_s24 = sshll.u32 %s185_s29, 3  ;;  %s313_s20 = sshll.u32 %s548_s16, 7 }
  0x4f   : > { %v195_v1 = vshrl.u32 %v194_v0, 7  ;;  %s189_s28 = scalar_select %p188_p12, %s548_s16, 1 }
  0x50   : > { %s187_s17 = scalar_lea.vmem [#allocation7], %s310_s24  ;;  %s659_s30 = scalar_lea.hbm %s702_s3, %s313_s20 }
  0x51   : > { %v196_v2 = vsub.s32 0, %v195_v1  ;;  %v202_v3 = vsub.s32 1, %v195_v1  ;;  %s311_s8 = sshll.u32 %s189_s28, 1  ;;  %s221_s19 = sshll.u32 %s187_s17, 4  ;;  %s654_s19 = int_to_ptr.vmem [resolvable:$true] %s221_s19 }
  0x52   : > { %s191_s11 = scalar_lea.vmem %s701_s2, %s311_s8  ;;  %s208_s4 = scalar_lea.sflag [#allocation4], %s185_s29 }
  0x53   : > { %v192_v4 = vld [vmem:[%s191_s11] sm:$0x3]  ;;  %s432_s5 = scalar_lea.vmem %s654_s19, 128  ;;  %p715_p1 = scmp.ne.s32.totalorder %s706_s22, 0 }
  0x54   : > { %v197_v7 = vrot.slane %v192_v4, %v196_v2  ;;  %v203_v8 = vrot.slane %v192_v4, %v202_v3  ;;  %p433_p10 = scmp.ne.s32.totalorder %s654_s19, %s432_s5  ;;  %s506_s16 = smov [#allocation7]  }
  0x55   : > { %s436_s26 = sshll.u32 %s506_s16, 4  ;;  %s437_s26 = int_to_ptr.vmem [resolvable:$false] %s436_s26 }
  0x56   : > { %v198_v9 = vmul.f32 %v197_v7, %v193_v5  ;;  %v204_v10 = vmul.f32 %v203_v8, %v199_v6  ;;  %p434_p2 = pnand %p433_p10, %p715_p1  ;;  %s438_s6 = scalar_lea.vmem %s437_s26, 256 }
  0x57   : > { %p439_p4 = scmp.lt.s32.totalorder %s654_s19, %s437_s26  ;;  %p440_p7 = scmp.lt.s32.totalorder %s438_s6, %s432_s5 }
  0x58   : > { %v205_v11 = vadd.f32 %v204_v10, %v198_v9  ;;  %p435_p3 = pneg %p434_p2 }
  0x59   : > { %p441_p8 = por %p440_p7, %p439_p4 }
  0x5a   : > { %206 = vst [vmem:[%s187_s17] sm:$0xff] %v205_v11 }
  0x5b   : > { %p442_p11 = pnand %p441_p8, %p435_p3 }
  0x5d   : > { %445 = shalt.err (!%p442_p11)
}
  0x5e   : > { %s446_s7 = scalar_lea.hbm %s659_s30, 128  ;;  %s450_s28 = scalar_lea.hbm %s702_s3, 256 }
  0x5f   : > { %p447_p13 = scmp.ne.s32.totalorder %s659_s30, %s446_s7  ;;  %p451_p5 = scmp.lt.u32.totalorder %s659_s30, %s702_s3 }
  0x60   : > { %p452_p9 = scmp.lt.u32.totalorder %s450_s28, %s446_s7  ;;  %p454_p10 = scmp.lt.u32.totalorder %s446_s7, %s659_s30 }
  0x61   : > { %p448_p6 = pnand %p447_p13, %p715_p1 }
  0x62   : > { %p453_p12 = por %p452_p9, %p451_p5 }
  0x63   : > { %p449_p0 = pneg %p448_p6 }
  0x64   : > { %p455_p2 = por %p454_p10, %p453_p12 }
  0x66   : > { %p456_p3 = pnand %p455_p2, %p449_p0 }
  0x68   : > { %459 = shalt.err (!%p456_p3)
}
  0x69   : > { %324 = dma.vmem_to_hbm [thread:$0]  (%p715_p1), %s654_s19, 128, %s659_s30, %s208_s4  }
  0x6a PF: > { %p341_p4 = scmp.ge.s32.totalorder %s502_s15, 2  ;;  %s233_s10 = sand.u32 1, %s490_s12  }
  0x6b   : > { %p716_p7 = scmp.ne.s32.totalorder %s707_s23, 0  ;;  %s234_s11 = scalar_lea.sflag [#allocation4], %s233_s10 }
  0x6d   : > { %p334_p8 = pnand %p341_p4, %p716_p7 }
  0x6f   : > { %485 = dma.done.wait (!%p334_p8), %s234_s11, 128  }
  0x70   : > { %487 = vsyncadd (!%p334_p8), %s234_s11, 4294967168  ;;  %p15_p11 = scmp.ge.s32.totalorder %s552_s18, 4   ;;  %s717_s12 = smov %s494_s13 }
  0x71   : > { %s718_s13 = smov %s498_s14  ;;  %s719_s14 = smov %s563_s21 }
  0x72   : > { %s720_s15 = smov %s552_s18  ;;  %17 = sbr.rel (!%p15_p11) target bundleno = 5 (0x5), region = 76 }
  0x79   :  { %239 = vsyncpa [#allocation3], 1 }
  0x7a   :  { %241 = vsyncpa [#allocation3 + $0x1], 1 }
  0x7b   :  { %242 = vsyncpa [#allocation6], 1 }
  0x7c   :  { %243 = vsyncpa [#allocation4], 1 }
  0x7d   :  { %245 = vsyncpa [#allocation4 + $0x1], 1 }

</bundles_post_ra>
